<compile_context>
chip_gen: v7x
topology: tpu7x:2x2x1
jax: 0.10.0
libtpu: 0.0.40
codegen_flags: <defaults>
</compile_context>

<pallas_src>
import functools

import jax
import jax.numpy as jnp
import numpy as np
from jax import lax
from jax.experimental import pallas as pl
from jax.experimental.pallas import tpu as pltpu

LANE = 128
MAX_BLOCK_ROWS = 4096  # (4096,128) f32 block = 2 MiB; x2 inputs x2 buffers = 8 MiB VMEM


def _make_kernel(rows, cols, bm, total_elems, coeff_bce):
    total_elems_f = float(total_elems)
    coeff = float(coeff_bce)
    ragged = (rows % bm) != 0            # static: does any block need masking?
    acc_rows = 8 if (bm % 8 == 0) else 1  # static: accumulator height

    def _partial_sum(a):
        # (bm, cols) -> (acc_rows, cols).  When bm is a sublane multiple this
        # is a layout-preserving reshape + leading-axis sum: pure elementwise
        # vreg adds, no cross-sublane XLU traffic per step.
        if acc_rows == 8:
            return jnp.sum(a.reshape(bm // 8, 8, cols), axis=0)
        return jnp.sum(a, axis=0, keepdims=True)

    def kernel(x_ref, t_ref, o_ref, pos_acc, neg_acc, bce_pos_acc, bce_neg_acc):
        i = pl.program_id(0)

        @pl.when(i == 0)
        def _init():
            pos_acc[...] = jnp.zeros_like(pos_acc)
            neg_acc[...] = jnp.zeros_like(neg_acc)
            bce_pos_acc[...] = jnp.zeros_like(bce_pos_acc)
            bce_neg_acc[...] = jnp.zeros_like(bce_neg_acc)

        x = x_ref[...].astype(jnp.float32)
        t = t_ref[...].astype(jnp.float32)

        if ragged:
            # Rows past the logical end of the array (ragged last block) get
            # target forced to 2.0 -> neither pos nor neg -> zero weight, so
            # they contribute nothing.  Sublane-only iota keeps this cheap.
            row_idx = i * bm + lax.broadcasted_iota(jnp.int32, (bm, 1), 0)
            t = jnp.where(row_idx < rows, t, jnp.float32(2.0))

        pos = t == 1.0
        neg = t == 0.0

        # Numerically stable BCE-with-logits.
        softplus = jnp.log1p(jnp.exp(-jnp.abs(x)))
        bce_neg = jnp.maximum(x, 0.0) + softplus  # target == 0
        bce_pos = bce_neg - x                     # target == 1

        pos_acc[...] += _partial_sum(pos.astype(jnp.float32))
        neg_acc[...] += _partial_sum(neg.astype(jnp.float32))
        bce_pos_acc[...] += _partial_sum(jnp.where(pos, bce_pos, 0.0))
        bce_neg_acc[...] += _partial_sum(jnp.where(neg, bce_neg, 0.0))

        @pl.when(i == pl.num_programs(0) - 1)
        def _finalize():
            def _total(acc):                                     # -> (1, 1)
                s = jnp.sum(acc[...], axis=0, keepdims=True)      # (1, cols)
                return jnp.sum(s, axis=1, keepdims=True)          # (1, 1)

            pos_num = _total(pos_acc)
            neg_num = _total(neg_acc)
            s_pos = _total(bce_pos_acc)
            s_neg = _total(bce_neg_acc)
            sum_num = pos_num + neg_num
            wsum = neg_num * s_pos + pos_num * s_neg
            # NOTE: sum_num == 0 gives NaN, same as the PyTorch reference.
            o_ref[...] = (coeff * wsum / (sum_num * total_elems_f)).astype(o_ref.dtype)

    return kernel, acc_rows


@functools.partial(jax.jit, static_argnames=("coeff_bce",))
def boundary_loss(bd_pre, bd_gt, coeff_bce=20.0):
    n, l, c, h, w = bd_pre.shape
    assert c == 1, "PyTorch reference requires C == 1 (target has no C dim)"
    total = n * l * h * w

    # With C == 1 the permute(0,1,3,4,2) is a data-layout no-op, so a plain
    # contiguous reshape is free: prefer a lane-dense (rows, 128) view, else
    # fall back to (N*L*H, W).  No padding, no dtype copies in the wrapper.
    cols = LANE if total % LANE == 0 else w
    rows = total // cols
    x2 = bd_pre.reshape(rows, cols)
    t2 = bd_gt.reshape(rows, cols)

    # Block: full row extent if small (always a legal block shape), otherwise
    # MAX_BLOCK_ROWS (multiple of 8); ragged last block is masked in-kernel.
    bm = rows if rows <= MAX_BLOCK_ROWS else MAX_BLOCK_ROWS
    grid = (pl.cdiv(rows, bm),)

    kernel, acc_rows = _make_kernel(rows, cols, bm, total, float(coeff_bce))

    out = pl.pallas_call(
        kernel,
        out_shape=jax.ShapeDtypeStruct((1, 1), jnp.float32),
        grid_spec=pltpu.PrefetchScalarGridSpec(
            num_scalar_prefetch=0,
            grid=grid,
            in_specs=[
                pl.BlockSpec((bm, cols), lambda i: (i, 0)),
                pl.BlockSpec((bm, cols), lambda i: (i, 0)),
            ],
            out_specs=pl.BlockSpec((1, 1), lambda i: (0, 0)),
            scratch_shapes=[pltpu.VMEM((acc_rows, cols), jnp.float32)] * 4,
        ),
        compiler_params=pltpu.CompilerParams(
            dimension_semantics=("arbitrary",),
            vmem_limit_bytes=32 * 1024 * 1024),
    )(x2, t2)
    return out[0, 0]


def boundary_loss_ref(bd_pre, bd_gt, coeff_bce=20.0):
    """Pure-JAX reference reproducing the PyTorch weighted_bce exactly."""
    log_p = jnp.transpose(bd_pre, (0, 1, 3, 4, 2)).reshape(1, -1).astype(jnp.float32)
    tgt = bd_gt.reshape(1, -1).astype(jnp.float32)
    pos = tgt == 1.0
    neg = tgt == 0.0
    pos_num = jnp.sum(pos.astype(jnp.float32))
    neg_num = jnp.sum(neg.astype(jnp.float32))
    sum_num = pos_num + neg_num
    weight = jnp.where(pos, neg_num / sum_num,
                       jnp.where(neg, pos_num / sum_num, 0.0))
    bce = (jnp.maximum(log_p, 0.0) - log_p * tgt
           + jnp.log1p(jnp.exp(-jnp.abs(log_p))))
    return coeff_bce * jnp.mean(weight * bce)


if __name__ == "__main__":
    key = jax.random.PRNGKey(0)

    shapes = [
        (2, 1, 1, 16, 16),    # tiny, lane-dense view, single block, (1,cols) acc
        (2, 1, 1, 10, 24),    # total % 128 != 0 -> (N*L*H, W) fallback view
        (2, 1, 1, 400, 400),  # larger single-block, lane-dense, no masking
        (2, 1, 1, 720, 720),  # multi-block grid, ragged (masked) last block, (8,cols) acc
    ]

    for idx, shape in enumerate(shapes):
        key, k1, k2, k3 = jax.random.split(key, 4)
        n, l, c, h, w = shape
        bd_pre = jax.random.normal(k1, shape, dtype=jnp.float32)
        u = jax.random.uniform(k2, (n, l, h, w))
        bd_gt = (u > 0.4).astype(jnp.float32)
        if idx >= 2:
            # sprinkle a few "ignore" labels (neither 0 nor 1 -> weight 0)
            bd_gt = jnp.where(jax.random.uniform(k3, bd_gt.shape) > 0.95,
                              jnp.float32(2.0), bd_gt)

        loss = boundary_loss(bd_pre, bd_gt, coeff_bce=20.0)
        jax.block_until_ready(loss)

        loss_ref = boundary_loss_ref(bd_pre, bd_gt, coeff_bce=20.0)
        jax.block_until_ready(loss_ref)

        assert np.allclose(np.asarray(loss), np.asarray(loss_ref),
                           rtol=1e-5, atol=1e-5), (shape, loss, loss_ref)

    print("KERNEL_OK")
</pallas_src>

<mosaic_0001>
module attributes {stable_mosaic.version = 11 : i64} {
  func.func @kernel(%arg0: i32, %arg1: memref<4x128xf32, #tpu.memory_space<vmem>>, %arg2: memref<4x128xf32, #tpu.memory_space<vmem>>, %arg3: memref<1x1xf32, #tpu.memory_space<vmem>>, %arg4: memref<1x128xf32, #tpu.memory_space<vmem>>, %arg5: memref<1x128xf32, #tpu.memory_space<vmem>>, %arg6: memref<1x128xf32, #tpu.memory_space<vmem>>, %arg7: memref<1x128xf32, #tpu.memory_space<vmem>>) attributes {dimension_semantics = [#tpu.dimension_semantics<arbitrary>], iteration_bounds = array<i64: 1>, scalar_prefetch = 0 : i64, scratch_operands = 4 : i64, tpu.core_type = #tpu.core_type<tc>, window_params = [{transform_indices = @transform_0, window_bounds = array<i64: 4, 128>}, {transform_indices = @transform_1, window_bounds = array<i64: 4, 128>}, {pipeline_mode = #tpu.pipeline_mode<synchronous>, transform_indices = @transform_2, window_bounds = array<i64: 1, 1>}]} {
    %c0_i32 = arith.constant 0 : i32
    %0 = arith.cmpi eq, %arg0, %c0_i32 : i32
    %1 = arith.extui %0 : i1 to i32
    %c0_i32_0 = arith.constant 0 : i32
    %2 = arith.cmpi ne, %1, %c0_i32_0 : i32
    scf.if %2 {
      %cst_31 = arith.constant 0.000000e+00 : f32
      %49 = vector.broadcast %cst_31 : f32 to vector<1x128xf32>
      %c0_32 = arith.constant 0 : index
      %c0_33 = arith.constant 0 : index
      %50 = vector.load %arg4[%c0_32, %c0_33] : memref<1x128xf32, #tpu.memory_space<vmem>>, vector<1x128xf32>
      tpu.vector_store %arg4[%c0_32, %c0_33], %49 {strides = array<i32>} : memref<1x128xf32, #tpu.memory_space<vmem>>, vector<1x128xf32>,
      %cst_34 = arith.constant 0.000000e+00 : f32
      %51 = vector.broadcast %cst_34 : f32 to vector<1x128xf32>
      %c0_35 = arith.constant 0 : index
      %c0_36 = arith.constant 0 : index
      %52 = vector.load %arg5[%c0_35, %c0_36] : memref<1x128xf32, #tpu.memory_space<vmem>>, vector<1x128xf32>
      tpu.vector_store %arg5[%c0_35, %c0_36], %51 {strides = array<i32>} : memref<1x128xf32, #tpu.memory_space<vmem>>, vector<1x128xf32>,
      %cst_37 = arith.constant 0.000000e+00 : f32
      %53 = vector.broadcast %cst_37 : f32 to vector<1x128xf32>
      %c0_38 = arith.constant 0 : index
      %c0_39 = arith.constant 0 : index
      %54 = vector.load %arg6[%c0_38, %c0_39] : memref<1x128xf32, #tpu.memory_space<vmem>>, vector<1x128xf32>
      tpu.vector_store %arg6[%c0_38, %c0_39], %53 {strides = array<i32>} : memref<1x128xf32, #tpu.memory_space<vmem>>, vector<1x128xf32>,
      %cst_40 = arith.constant 0.000000e+00 : f32
      %55 = vector.broadcast %cst_40 : f32 to vector<1x128xf32>
      %c0_41 = arith.constant 0 : index
      %c0_42 = arith.constant 0 : index
      %56 = vector.load %arg7[%c0_41, %c0_42] : memref<1x128xf32, #tpu.memory_space<vmem>>, vector<1x128xf32>
      tpu.vector_store %arg7[%c0_41, %c0_42], %55 {strides = array<i32>} : memref<1x128xf32, #tpu.memory_space<vmem>>, vector<1x128xf32>,
    } else {
    }
    %c0 = arith.constant 0 : index
    %c0_1 = arith.constant 0 : index
    %3 = vector.load %arg1[%c0, %c0_1] : memref<4x128xf32, #tpu.memory_space<vmem>>, vector<4x128xf32>
    %c0_2 = arith.constant 0 : index
    %c0_3 = arith.constant 0 : index
    %4 = vector.load %arg2[%c0_2, %c0_3] : memref<4x128xf32, #tpu.memory_space<vmem>>, vector<4x128xf32>
    %cst = arith.constant 1.000000e+00 : f32
    %5 = vector.broadcast %cst : f32 to vector<4x128xf32>
    %6 = arith.cmpf oeq, %4, %5 : vector<4x128xf32>
    %cst_4 = arith.constant 0.000000e+00 : f32
    %7 = vector.broadcast %cst_4 : f32 to vector<4x128xf32>
    %8 = arith.cmpf oeq, %4, %7 : vector<4x128xf32>
    %9 = math.absf %3 : vector<4x128xf32>
    %cst_5 = arith.constant 0.000000e+00 : f32
    %10 = vector.broadcast %cst_5 : f32 to vector<4x128xf32>
    %11 = arith.subf %10, %9 : vector<4x128xf32>
    %12 = math.exp %11 : vector<4x128xf32>
    %13 = math.log1p %12 : vector<4x128xf32>
    %cst_6 = arith.constant 0.000000e+00 : f32
    %14 = vector.broadcast %cst_6 : f32 to vector<4x128xf32>
    %15 = arith.maximumf %3, %14 : vector<4x128xf32>
    %16 = arith.addf %15, %13 : vector<4x128xf32>
    %17 = arith.subf %16, %3 : vector<4x128xf32>
    %c0_7 = arith.constant 0 : index
    %c0_8 = arith.constant 0 : index
    %18 = vector.load %arg4[%c0_7, %c0_8] : memref<1x128xf32, #tpu.memory_space<vmem>>, vector<1x128xf32>
    %19 = arith.extui %6 : vector<4x128xi1> to vector<4x128xi32>
    %20 = arith.sitofp %19 : vector<4x128xi32> to vector<4x128xf32>
    %cst_9 = arith.constant dense<0.000000e+00> : vector<128xf32>
    %21 = vector.multi_reduction <add>, %20, %cst_9 [0] : vector<4x128xf32> to vector<128xf32>
    %22 = vector.shape_cast %21 : vector<128xf32> to vector<1x128xf32>
    %23 = arith.addf %18, %22 : vector<1x128xf32>
    %c0_10 = arith.constant 0 : index
    %c0_11 = arith.constant 0 : index
    %24 = vector.load %arg4[%c0_10, %c0_11] : memref<1x128xf32, #tpu.memory_space<vmem>>, vector<1x128xf32>
    tpu.vector_store %arg4[%c0_10, %c0_11], %23 {strides = array<i32>} : memref<1x128xf32, #tpu.memory_space<vmem>>, vector<1x128xf32>,
    %c0_12 = arith.constant 0 : index
    %c0_13 = arith.constant 0 : index
    %25 = vector.load %arg5[%c0_12, %c0_13] : memref<1x128xf32, #tpu.memory_space<vmem>>, vector<1x128xf32>
    %26 = arith.extui %8 : vector<4x128xi1> to vector<4x128xi32>
    %27 = arith.sitofp %26 : vector<4x128xi32> to vector<4x128xf32>
    %cst_14 = arith.constant dense<0.000000e+00> : vector<128xf32>
    %28 = vector.multi_reduction <add>, %27, %cst_14 [0] : vector<4x128xf32> to vector<128xf32>
    %29 = vector.shape_cast %28 : vector<128xf32> to vector<1x128xf32>
    %30 = arith.addf %25, %29 : vector<1x128xf32>
    %c0_15 = arith.constant 0 : index
    %c0_16 = arith.constant 0 : index
    %31 = vector.load %arg5[%c0_15, %c0_16] : memref<1x128xf32, #tpu.memory_space<vmem>>, vector<1x128xf32>
    tpu.vector_store %arg5[%c0_15, %c0_16], %30 {strides = array<i32>} : memref<1x128xf32, #tpu.memory_space<vmem>>, vector<1x128xf32>,
    %c0_17 = arith.constant 0 : index
    %c0_18 = arith.constant 0 : index
    %32 = vector.load %arg6[%c0_17, %c0_18] : memref<1x128xf32, #tpu.memory_space<vmem>>, vector<1x128xf32>
    %cst_19 = arith.constant 0.000000e+00 : f32
    %33 = vector.broadcast %cst_19 : f32 to vector<4x128xf32>
    %34 = arith.select %6, %17, %33 : vector<4x128xi1>, vector<4x128xf32>
    %cst_20 = arith.constant dense<0.000000e+00> : vector<128xf32>
    %35 = vector.multi_reduction <add>, %34, %cst_20 [0] : vector<4x128xf32> to vector<128xf32>
    %36 = vector.shape_cast %35 : vector<128xf32> to vector<1x128xf32>
    %37 = arith.addf %32, %36 : vector<1x128xf32>
    %c0_21 = arith.constant 0 : index
    %c0_22 = arith.constant 0 : index
    %38 = vector.load %arg6[%c0_21, %c0_22] : memref<1x128xf32, #tpu.memory_space<vmem>>, vector<1x128xf32>
    tpu.vector_store %arg6[%c0_21, %c0_22], %37 {strides = array<i32>} : memref<1x128xf32, #tpu.memory_space<vmem>>, vector<1x128xf32>,
    %c0_23 = arith.constant 0 : index
    %c0_24 = arith.constant 0 : index
    %39 = vector.load %arg7[%c0_23, %c0_24] : memref<1x128xf32, #tpu.memory_space<vmem>>, vector<1x128xf32>
    %cst_25 = arith.constant 0.000000e+00 : f32
    %40 = vector.broadcast %cst_25 : f32 to vector<4x128xf32>
    %41 = arith.select %8, %16, %40 : vector<4x128xi1>, vector<4x128xf32>
    %cst_26 = arith.constant dense<0.000000e+00> : vector<128xf32>
    %42 = vector.multi_reduction <add>, %41, %cst_26 [0] : vector<4x128xf32> to vector<128xf32>
    %43 = vector.shape_cast %42 : vector<128xf32> to vector<1x128xf32>
    %44 = arith.addf %39, %43 : vector<1x128xf32>
    %c0_27 = arith.constant 0 : index
    %c0_28 = arith.constant 0 : index
    %45 = vector.load %arg7[%c0_27, %c0_28] : memref<1x128xf32, #tpu.memory_space<vmem>>, vector<1x128xf32>
    tpu.vector_store %arg7[%c0_27, %c0_28], %44 {strides = array<i32>} : memref<1x128xf32, #tpu.memory_space<vmem>>, vector<1x128xf32>,
    %c0_i32_29 = arith.constant 0 : i32
    %46 = arith.cmpi eq, %arg0, %c0_i32_29 : i32
    %47 = arith.extui %46 : i1 to i32
    %c0_i32_30 = arith.constant 0 : i32
    %48 = arith.cmpi ne, %47, %c0_i32_30 : i32
    scf.if %48 {
      %c0_31 = arith.constant 0 : index
      %c0_32 = arith.constant 0 : index
      %49 = vector.load %arg4[%c0_31, %c0_32] : memref<1x128xf32, #tpu.memory_space<vmem>>, vector<1x128xf32>
      %cst_33 = arith.constant dense<0.000000e+00> : vector<128xf32>
      %50 = vector.multi_reduction <add>, %49, %cst_33 [0] : vector<1x128xf32> to vector<128xf32>
      %51 = vector.shape_cast %50 : vector<128xf32> to vector<1x128xf32>
      %cst_34 = arith.constant dense<0.000000e+00> : vector<1xf32>
      %52 = vector.multi_reduction <add>, %51, %cst_34 [1] : vector<1x128xf32> to vector<1xf32>
      %53 = vector.shape_cast %52 : vector<1xf32> to vector<1x1xf32>
      %c0_35 = arith.constant 0 : index
      %c0_36 = arith.constant 0 : index
      %54 = vector.load %arg5[%c0_35, %c0_36] : memref<1x128xf32, #tpu.memory_space<vmem>>, vector<1x128xf32>
      %cst_37 = arith.constant dense<0.000000e+00> : vector<128xf32>
      %55 = vector.multi_reduction <add>, %54, %cst_37 [0] : vector<1x128xf32> to vector<128xf32>
      %56 = vector.shape_cast %55 : vector<128xf32> to vector<1x128xf32>
      %cst_38 = arith.constant dense<0.000000e+00> : vector<1xf32>
      %57 = vector.multi_reduction <add>, %56, %cst_38 [1] : vector<1x128xf32> to vector<1xf32>
      %58 = vector.shape_cast %57 : vector<1xf32> to vector<1x1xf32>
      %c0_39 = arith.constant 0 : index
      %c0_40 = arith.constant 0 : index
      %59 = vector.load %arg6[%c0_39, %c0_40] : memref<1x128xf32, #tpu.memory_space<vmem>>, vector<1x128xf32>
      %cst_41 = arith.constant dense<0.000000e+00> : vector<128xf32>
      %60 = vector.multi_reduction <add>, %59, %cst_41 [0] : vector<1x128xf32> to vector<128xf32>
      %61 = vector.shape_cast %60 : vector<128xf32> to vector<1x128xf32>
      %cst_42 = arith.constant dense<0.000000e+00> : vector<1xf32>
      %62 = vector.multi_reduction <add>, %61, %cst_42 [1] : vector<1x128xf32> to vector<1xf32>
      %63 = vector.shape_cast %62 : vector<1xf32> to vector<1x1xf32>
      %c0_43 = arith.constant 0 : index
      %c0_44 = arith.constant 0 : index
      %64 = vector.load %arg7[%c0_43, %c0_44] : memref<1x128xf32, #tpu.memory_space<vmem>>, vector<1x128xf32>
      %cst_45 = arith.constant dense<0.000000e+00> : vector<128xf32>
      %65 = vector.multi_reduction <add>, %64, %cst_45 [0] : vector<1x128xf32> to vector<128xf32>
      %66 = vector.shape_cast %65 : vector<128xf32> to vector<1x128xf32>
      %cst_46 = arith.constant dense<0.000000e+00> : vector<1xf32>
      %67 = vector.multi_reduction <add>, %66, %cst_46 [1] : vector<1x128xf32> to vector<1xf32>
      %68 = vector.shape_cast %67 : vector<1xf32> to vector<1x1xf32>
      %69 = arith.addf %53, %58 : vector<1x1xf32>
      %70 = arith.mulf %58, %63 : vector<1x1xf32>
      %71 = arith.mulf %53, %68 : vector<1x1xf32>
      %72 = arith.addf %70, %71 : vector<1x1xf32>
      %cst_47 = arith.constant 2.000000e+01 : f32
      %73 = vector.broadcast %cst_47 : f32 to vector<1x1xf32>
      %74 = arith.mulf %73, %72 : vector<1x1xf32>
      %cst_48 = arith.constant 5.120000e+02 : f32
      %75 = vector.broadcast %cst_48 : f32 to vector<1x1xf32>
      %76 = arith.mulf %69, %75 : vector<1x1xf32>
      %77 = arith.divf %74, %76 : vector<1x1xf32>
      %c0_49 = arith.constant 0 : index
      %c0_50 = arith.constant 0 : index
      %78 = vector.load %arg3[%c0_49, %c0_50] : memref<1x1xf32, #tpu.memory_space<vmem>>, vector<1x1xf32>
      tpu.vector_store %arg3[%c0_49, %c0_50], %77 {strides = array<i32>} : memref<1x1xf32, #tpu.memory_space<vmem>>, vector<1x1xf32>,
    } else {
    }
    return
  }
  func.func @transform_0(%arg0: i32) -> (i32, i32) {
    %c0_i32 = arith.constant 0 : i32
    %c0_i32_0 = arith.constant 0 : i32
    return %arg0, %c0_i32 : i32, i32
  }
  func.func @transform_1(%arg0: i32) -> (i32, i32) {
    %c0_i32 = arith.constant 0 : i32
    %c0_i32_0 = arith.constant 0 : i32
    return %arg0, %c0_i32 : i32, i32
  }
  func.func @transform_2(%arg0: i32) -> (i32, i32) {
    %c0_i32 = arith.constant 0 : i32
    %c0_i32_0 = arith.constant 0 : i32
    %c0_i32_1 = arith.constant 0 : i32
    return %c0_i32, %c0_i32_0 : i32, i32
  }
}

</mosaic_0001>

<bundles_post_ra>
// kernel: boundary_loss.1
= control target key start
LH: loop header
LB: loop body
LE: loop exit
PB: predicated region body
PF: predicated region fallthrough
CT: control target
= control target key end

     0   :  { %vm43_vm0 = vcmask 1043456   ;;  %v169_v1 = vmov 0.0   ;;  %s216_s0 = inlined_call_operand.vmem [shape: f32[4,128], index: 0, kind: input, shape index: {}]   ;;  %s217_s1 = inlined_call_operand.vmem [shape: f32[4,128], index: 1, kind: input, shape index: {}]   ;;  %s218_s2 = inlined_call_operand.hbm [shape: f32[1,1], index: 2, kind: output, shape index: {}]  }
   0x1   :  { %v21_v0 = vld [vmem:[%s217_s1] sm:$0xf]  ;;  %16 = vst [vmem:[#allocation2] sm:$0x1] %v169_v1  ;;  %17 = vst [vmem:[#allocation3] sm:$0x1] %v169_v1 }
   0x2   :  { %vm22_vm1 = vcmp.eq.f32.partialorder %v21_v0, 1.0  ;;  %18 = vst [vmem:[#allocation4] sm:$0x1] %v169_v1  ;;  %19 = vst [vmem:[#allocation5] sm:$0x1] %v169_v1  ;;  %vm23_vm2 = vcmp.eq.f32.partialorder %v21_v0, 0.0 }
   0x3   :  { %v20_v2 = vld [vmem:[%s216_s0] sm:$0xf] }
   0x4   :  { %7 = vsyncpa [#allocation7], 0  ;;  %v135_v3 = vsel %vm22_vm1, 1.0, %v169_v1  ;;  %v136_v4 = vsel %vm23_vm2, 1.0, %v169_v1  ;;  %v24_v5 = vand.u32 2147483647, %v20_v2 }
   0x5   :  { %v44_v6 = vsel %vm43_vm0, %v135_v3, 0.0  ;;  %v56_v7 = vsel %vm43_vm0, %v136_v4, 0.0  ;;  %vm92_vm3 = vcmask 1040384   ;;  %v37_v37 = vmax.f32 %v20_v2, 0.0  ;;  %s170_s0 = smov [#allocation6]  }
   0x6   :  { %v45_v8 = vrot.slane %v44_v6, 4  ;;  %v57_v9 = vrot.slane %v56_v7, 4  ;;  %v25_v10 = vsub.f32 0.0, %v24_v5  ;;  %s127_s1 = sshll.u32 %s170_s0, 4  ;;  %vm119_vm5 = vcmask 0   ;;  %s128_s1 = int_to_ptr.vmem [resolvable:$true] %s127_s1 }
   0x7   :  { %s145_s13 = scalar_lea.vmem %s128_s1, 16  ;;  %s149_s14 = scalar_lea.vmem %s128_s1, 32 }
   0x8   :  { %v46_v11 = vadd.f32 %v45_v8, %v44_v6  ;;  %v58_v12 = vadd.f32 %v57_v9, %v56_v7  ;;  %v26_v13 = vmul.f32 1.442695, %v25_v10  ;;  %v40_v20 = vld [vmem:[#allocation2] sm:$0x1]  ;;  %v53_v21 = vld [vmem:[#allocation3] sm:$0x1]  ;;  %p146_p0 = scmp.ne.s32.totalorder %s128_s1, %s145_s13  ;;  %p150_p1 = scmp.lt.s32.totalorder %s128_s1, %s128_s1 }
   0x9   :  { %v76_v55 = vld [vmem:[#allocation5] sm:$0x1]  ;;  %v65_v58 = vld [vmem:[#allocation4] sm:$0x1]  ;;  %p151_p2 = scmp.lt.s32.totalorder %s149_s14, %s145_s13 }
   0xa   :  { %v47_v14 = vrot.slane %v46_v11, 2  ;;  %v59_v15 = vrot.slane %v58_v12, 2  ;;  %139 = vpow2.f32 %v26_v13 }
   0xb   :  { %p152_p3 = por %p151_p2, %p150_p1 }
   0xc   :  { %v48_v16 = vadd.f32 %v47_v14, %v46_v11  ;;  %v60_v17 = vadd.f32 %v59_v15, %v58_v12 }
   0xd   :  { %p153_p4 = pnand %p152_p3, %p146_p0 }
   0xe   :  { %v49_v18 = vrot.slane %v48_v16, 1  ;;  %v61_v19 = vrot.slane %v60_v17, 1 }
  0x10   :  { %v50_v22 = vadd.f32 %v49_v18, %v48_v16  ;;  %v62_v23 = vadd.f32 %v61_v19, %v60_v17 }
  0x12   :  { %v51_v24 = vadd.f32 %v50_v22, %v40_v20  ;;  %v63_v25 = vadd.f32 %v62_v23, %v53_v21 }
  0x14   :  { %v140_v26 = vpop.eup %139  ;;  %52 = vst [vmem:[#allocation2] sm:$0x1] %v51_v24  ;;  %64 = vst [vmem:[#allocation3] sm:$0x1] %v63_v25 }
  0x15   :  { %v28_v27 = vadd.f32 1.0, %v140_v26  ;;  %v31_v28 = vmul.f32 -0.5, %v140_v26  ;;  %v34_v33 = vand.u32 2147483647, %v140_v26 }
  0x17   :  { %141 = vlog2.f32 %v28_v27  ;;  %v32_v32 = vadd.f32 1.0, %v31_v28  ;;  %vm35_vm4 = vcmp.lt.f32.partialorder %v34_v33, 0.0004427343 }
  0x19   :  { %v33_v35 = vmul.f32 %v140_v26, %v32_v32 }
  0x1b   :  { %v90_v29 = vld [vmem:[#allocation2] sm:$0x1]  ;;  %v96_v30 = vld [vmem:[#allocation3] sm:$0x1] }
  0x1c   :  { %v93_v31 = vsel %vm92_vm3, %v90_v29, 0.0  ;;  %v98_v34 = vsel %vm92_vm3, %v96_v30, 0.0 }
  0x1d   :  { %94 = vadd.xlane.f32.xlu0 %v93_v31 }
  0x21   :  { %v142_v36 = vpop.eup %141  ;;  %99 = vadd.xlane.f32.xlu0 %v98_v34 }
  0x22   :  { %v30_v38 = vmul.f32 0.6931472, %v142_v36 }
  0x24   :  { %v36_v39 = vsel %vm35_vm4, %v33_v35, %v30_v38 }
  0x25   :  { %v38_v40 = vadd.f32 %v37_v37, %v36_v39 }
  0x27   :  { %v39_v41 = vsub.f32 %v38_v40, %v20_v2  ;;  %v77_v42 = vsel %vm23_vm2, %v38_v40, 0.0 }
  0x28   :  { %v78_v43 = vsel %vm43_vm0, %v77_v42, 0.0 }
  0x29   :  { %v66_v44 = vsel %vm22_vm1, %v39_v41, 0.0  ;;  %v79_v45 = vrot.slane %v78_v43, 4 }
  0x2a   :  { %v67_v46 = vsel %vm43_vm0, %v66_v44, 0.0 }
  0x2b   :  { %v68_v47 = vrot.slane %v67_v46, 4  ;;  %v80_v48 = vadd.f32 %v79_v45, %v78_v43 }
  0x2d   :  { %v69_v49 = vadd.f32 %v68_v47, %v67_v46  ;;  %v81_v50 = vrot.slane %v80_v48, 2 }
  0x2f   :  { %v70_v51 = vrot.slane %v69_v49, 2  ;;  %v82_v52 = vadd.f32 %v81_v50, %v80_v48 }
  0x31   :  { %v71_v53 = vadd.f32 %v70_v51, %v69_v49  ;;  %v83_v54 = vrot.slane %v82_v52, 1 }
  0x33   :  { %v72_v56 = vrot.slane %v71_v53, 1  ;;  %v84_v57 = vadd.f32 %v83_v54, %v82_v52 }
  0x35   :  { %v73_v59 = vadd.f32 %v72_v56, %v71_v53  ;;  %v85_v60 = vadd.f32 %v84_v57, %v76_v55 }
  0x37   :  { %v74_v61 = vadd.f32 %v73_v59, %v65_v58  ;;  %86 = vst [vmem:[#allocation5] sm:$0x1] %v85_v60 }
  0x39   :  { %75 = vst [vmem:[#allocation4] sm:$0x1] %v74_v61 }
  0x3e   :  { %v106_v63 = vld [vmem:[#allocation5] sm:$0x1] }
  0x3f   :  { %v108_v1 = vsel %vm92_vm3, %v106_v63, 0.0 }
  0x40   :  { %v101_v62 = vld [vmem:[#allocation4] sm:$0x1] }
  0x41   :  { %v103_v0 = vsel %vm92_vm3, %v101_v62, 0.0 }
  0x42   :  { %104 = vadd.xlane.f32.xlu1 %v103_v0 }
  0x46   :  { %109 = vadd.xlane.f32.xlu1 %v108_v1 }
  0xaa   :  { %v95_v2 = vpop.xlane.xlu0 %94 }
  0xae   :  { %v100_v3 = vpop.xlane.xlu0 %99 }
  0xaf   :  { %v111_v4 = vadd.f32 %v100_v3, %v95_v2 }
  0xb1   :  { %v116_v5 = vmul.f32 512.0, %v111_v4 }
  0xb3   :  { %143 = vrcp.f32 %v116_v5 }
  0xbd   :  { %v144_v12 = vpop.eup %143 }
  0xcf   :  { %v105_v6 = vpop.xlane.xlu1 %104 }
  0xd0   :  { %v112_v8 = vmul.f32 %v105_v6, %v100_v3 }
  0xd3   :  { %v110_v7 = vpop.xlane.xlu1 %109 }
  0xd4   :  { %v113_v9 = vmul.f32 %v110_v7, %v95_v2 }
  0xd6   :  { %v114_v10 = vadd.f32 %v113_v9, %v112_v8 }
  0xd8   :  { %v115_v11 = vmul.f32 20.0, %v114_v10 }
  0xda   :  { %v118_v13 = vmul.f32 %v144_v12, %v115_v11 }
  0xdc   :  { %120 = vst.msk [vmem:[#allocation6] sm:$0x1] %vm119_vm5, %v118_v13 }
  0xdd   :  { %156 = shalt.err (!%p153_p4)
}
  0xde   :  { %s157_s17 = scalar_lea.hbm %s218_s2, 16 }
  0xdf   :  { %p158_p5 = scmp.ne.s32.totalorder %s218_s2, %s157_s17  ;;  %p161_p6 = scmp.lt.u32.totalorder %s157_s17, %s218_s2 }
  0xe1   :  { %p163_p7 = pnand %p161_p6, %p158_p5 }
  0xe3   :  { %166 = shalt.err (!%p163_p7)
}
  0xe4   :  { %130 = dma.vmem_to_hbm [thread:$0]  %s128_s1, 16, %s218_s2, [#allocation7]  }
  0xe5   :  { %167 = dma.done.wait [#allocation7], 16  }
  0xe6   :  { %168 = vsyncadd [#allocation7], 4294967280 }
  0xe7   :  { %134 = vsyncpa [#allocation7], 1 }

</bundles_post_ra>
